<compile_context>
chip_gen: v7x
topology: tpu7x:2x2x1
jax: 0.10.0
libtpu: 0.0.40
codegen_flags: <defaults>
</compile_context>

<pallas_src>
import functools

import jax
import jax.numpy as jnp
from jax.experimental import pallas as pl
from jax.experimental.pallas import tpu as pltpu

INPUT_CHANNEL = 6
C_PAD = 8            # channel dim padded 6 -> 8 for clean sublane packing


def _round_up(x, m):
    return (x + m - 1) // m * m


def _choose_row_tile(bp_pad, k, target_rows=2048):
    """Pick RP (rows of the B*P axis per grid step): multiple of 8 dividing bp_pad."""
    divisors = [d for d in range(8, bp_pad + 1, 8) if bp_pad % d == 0]
    rp = divisors[0]
    for d in divisors:
        if k * d <= target_rows:   # keep ~target rows of matmul M per step
            rp = d
    # Prefer >= 2 grid steps so parallel grid sharding has work to split.
    if bp_pad // rp == 1 and len(divisors) >= 2:
        rp = divisors[-2]
    return rp


def pointnet_kernel(x_ref,
                    w1_ref, t1_ref,
                    w2_ref, t2_ref,
                    w3_ref, t3_ref,
                    w4_ref, b4_ref,
                    o_ref, *, K, RP):
    # x block: (K*RP, C_PAD) bf16, rows ordered k-major / patch-row-minor.
    x = x_ref[...]

    # net1 layer 1: Linear(6,64) [BN scale folded into w] + shift + ReLU
    h = jnp.dot(x, w1_ref[...], preferred_element_type=jnp.float32)
    h = jnp.maximum(h + t1_ref[...], 0.0).astype(jnp.bfloat16)

    # net1 layer 2: Linear(64,128) + shift + ReLU
    h = jnp.dot(h, w2_ref[...], preferred_element_type=jnp.float32)
    h = jnp.maximum(h + t2_ref[...], 0.0).astype(jnp.bfloat16)

    # net1 layer 3: Linear(128,256) + shift + ReLU (kept f32 for the max)
    h = jnp.dot(h, w3_ref[...], preferred_element_type=jnp.float32)
    h = jnp.maximum(h + t3_ref[...], 0.0)                         # (K*RP, 256) f32

    # max over K: pairwise tree of elementwise maxima over static, sublane-
    # aligned (RP, 256) slabs (rows are k-major, so slab k is rows k*RP..).
    slabs = [h[k * RP:(k + 1) * RP, :] for k in range(K)]
    while len(slabs) > 1:
        nxt = [jnp.maximum(a, b) for a, b in zip(slabs[0::2], slabs[1::2])]
        if len(slabs) % 2:
            nxt.append(slabs[-1])
        slabs = nxt
    hmax = slabs[0]                                               # (RP, 256) f32

    # net2: Linear(256, T_pad)
    out = jnp.dot(hmax.astype(jnp.bfloat16), w4_ref[...],
                  preferred_element_type=jnp.float32)
    o_ref[...] = (out + b4_ref[...]).astype(o_ref.dtype)


def pointnet_forward(x, params):
    """x: [B, P, K, 6] float32 -> [B, P, num_dim_token] float32."""
    B, P, K, C = x.shape
    assert C == INPUT_CHANNEL
    T = params["w4"].shape[1]
    T_pad = _round_up(T, 128)

    BP = B * P
    BP_pad = _round_up(BP, 8)
    RP = _choose_row_tile(BP_pad, K)
    G = BP_pad // RP                               # grid size

    # ---- host-side layout plumbing (outside the kernel) --------------------
    # [B,P,K,C] -> pad -> [G, RP, K, C_PAD] -> k-major -> flat (G*K*RP, C_PAD)
    xr = x.reshape(BP, K, C)
    xr = jnp.pad(xr, ((0, BP_pad - BP), (0, 0), (0, C_PAD - C)))
    xr = xr.reshape(G, RP, K, C_PAD).transpose(0, 2, 1, 3)
    xr = xr.reshape(G * K * RP, C_PAD).astype(jnp.bfloat16)

    # Weights: BN scale already folded in make_params; cast to bf16, pad.
    w1 = jnp.pad(params["w1"], ((0, C_PAD - C), (0, 0))).astype(jnp.bfloat16)
    w2 = params["w2"].astype(jnp.bfloat16)
    w3 = params["w3"].astype(jnp.bfloat16)
    w4 = jnp.pad(params["w4"], ((0, 0), (0, T_pad - T))).astype(jnp.bfloat16)
    t1, t2, t3 = params["t1"], params["t2"], params["t3"]          # f32 shifts
    b4 = jnp.pad(params["b4"], ((0, 0), (0, T_pad - T)))           # f32

    kernel = functools.partial(pointnet_kernel, K=K, RP=RP)

    out = pl.pallas_call(
        kernel,
        out_shape=jax.ShapeDtypeStruct((BP_pad, T_pad), jnp.float32),
        grid=(G,),
        in_specs=[
            pl.BlockSpec((K * RP, C_PAD), lambda i: (i, 0)),       # x slab
            pl.BlockSpec((C_PAD, 64), lambda i: (0, 0)),           # w1
            pl.BlockSpec((1, 64), lambda i: (0, 0)),               # t1
            pl.BlockSpec((64, 128), lambda i: (0, 0)),             # w2
            pl.BlockSpec((1, 128), lambda i: (0, 0)),              # t2
            pl.BlockSpec((128, 256), lambda i: (0, 0)),            # w3
            pl.BlockSpec((1, 256), lambda i: (0, 0)),              # t3
            pl.BlockSpec((256, T_pad), lambda i: (0, 0)),          # w4
            pl.BlockSpec((1, T_pad), lambda i: (0, 0)),            # b4
        ],
        out_specs=pl.BlockSpec((RP, T_pad), lambda i: (i, 0)),
        compiler_params=pltpu.CompilerParams(
            dimension_semantics=("parallel",),
            vmem_limit_bytes=32 * 1024 * 1024),
    )(xr, w1, t1, w2, t2, w3, t3, w4, b4)

    return out[:BP, :T].reshape(B, P, T)


# ----------------------------------------------------------------------------
# Deterministic parameter construction (Linear + folded eval-mode BatchNorm).
# The BN scale is folded directly into the weight columns; only the shift
# remains as a separate per-channel vector.
# ----------------------------------------------------------------------------
def _linear_init(key, cin, cout):
    kw, kb = jax.random.split(key)
    bound = 1.0 / (cin ** 0.5)
    w = jax.random.uniform(kw, (cin, cout), jnp.float32, -bound, bound)
    b = jax.random.uniform(kb, (1, cout), jnp.float32, -bound, bound)
    return w, b


def _bn_init(key, c):
    kg, kb, km, kv = jax.random.split(key, 4)
    gamma = jax.random.uniform(kg, (1, c), jnp.float32, 0.5, 1.5)
    beta = 0.1 * jax.random.normal(kb, (1, c), jnp.float32)
    mean = 0.1 * jax.random.normal(km, (1, c), jnp.float32)
    var = jax.random.uniform(kv, (1, c), jnp.float32, 0.5, 1.5)
    return gamma, beta, mean, var


def make_params(key, num_dim_token):
    eps = 1e-5
    keys = jax.random.split(key, 8)
    params = {}
    dims = [(INPUT_CHANNEL, 64), (64, 128), (128, 256)]
    for i, (cin, cout) in enumerate(dims, start=1):
        w, b = _linear_init(keys[2 * (i - 1)], cin, cout)
        gamma, beta, mean, var = _bn_init(keys[2 * (i - 1) + 1], cout)
        scale = gamma / jnp.sqrt(var + eps)             # eval-mode BN fold
        params[f"w{i}"] = w * scale                     # scale folded into w
        params[f"t{i}"] = (b - mean) * scale + beta     # bias+BN shift
    w4, b4 = _linear_init(keys[6], 256, num_dim_token)
    params["w4"] = w4
    params["b4"] = b4
    return params


def pointnet_ref(x, params):
    """Pure-JAX (f32) reference for correctness checking."""
    B, P, K, C = x.shape
    h = x.reshape(-1, C)
    for i in (1, 2, 3):
        h = jnp.maximum(h @ params[f"w{i}"] + params[f"t{i}"], 0.0)
    h = h.reshape(B, P, K, -1).max(axis=2)
    return h @ params["w4"] + params["b4"]


if __name__ == "__main__":
    B, P, K = 2, 8, 16          # small shapes consistent with [B, P, K, 6]
    num_dim_token = 64          # args.num_dim_token

    key = jax.random.PRNGKey(0)
    k_in, k_par = jax.random.split(key)

    x = jax.random.normal(k_in, (B, P, K, INPUT_CHANNEL), jnp.float32)
    params = make_params(k_par, num_dim_token)

    out = jax.jit(pointnet_forward)(x, params)
    out = jax.block_until_ready(out)

    ref = pointnet_ref(x, params)
    assert out.shape == (B, P, num_dim_token)
    # bf16 MXU datapath with f32 accumulation -> relaxed tolerance.
    assert jnp.allclose(out, ref, rtol=5e-2, atol=5e-2), "mismatch vs reference"

    print("KERNEL_OK")
</pallas_src>

<mosaic_0001>
module attributes {stable_mosaic.version = 11 : i64} {
  func.func @pointnet_kernel(%arg0: i32, %arg1: memref<128x8xbf16, #tpu.memory_space<vmem>>, %arg2: memref<8x64xbf16, #tpu.memory_space<vmem>>, %arg3: memref<1x64xf32, #tpu.memory_space<vmem>>, %arg4: memref<64x128xbf16, #tpu.memory_space<vmem>>, %arg5: memref<1x128xf32, #tpu.memory_space<vmem>>, %arg6: memref<128x256xbf16, #tpu.memory_space<vmem>>, %arg7: memref<1x256xf32, #tpu.memory_space<vmem>>, %arg8: memref<256x128xbf16, #tpu.memory_space<vmem>>, %arg9: memref<1x128xf32, #tpu.memory_space<vmem>>, %arg10: memref<8x128xf32, #tpu.memory_space<vmem>>) attributes {dimension_semantics = [#tpu.dimension_semantics<parallel>], iteration_bounds = array<i64: 2>, scalar_prefetch = 0 : i64, scratch_operands = 0 : i64, tpu.core_type = #tpu.core_type<tc>, window_params = [{transform_indices = @transform_0, window_bounds = array<i64: 128, 8>}, {pipeline_mode = #tpu.pipeline_mode<synchronous>, transform_indices = @transform_1, window_bounds = array<i64: 8, 64>}, {pipeline_mode = #tpu.pipeline_mode<synchronous>, transform_indices = @transform_2, window_bounds = array<i64: 1, 64>}, {pipeline_mode = #tpu.pipeline_mode<synchronous>, transform_indices = @transform_3, window_bounds = array<i64: 64, 128>}, {pipeline_mode = #tpu.pipeline_mode<synchronous>, transform_indices = @transform_4, window_bounds = array<i64: 1, 128>}, {pipeline_mode = #tpu.pipeline_mode<synchronous>, transform_indices = @transform_5, window_bounds = array<i64: 128, 256>}, {pipeline_mode = #tpu.pipeline_mode<synchronous>, transform_indices = @transform_6, window_bounds = array<i64: 1, 256>}, {pipeline_mode = #tpu.pipeline_mode<synchronous>, transform_indices = @transform_7, window_bounds = array<i64: 256, 128>}, {pipeline_mode = #tpu.pipeline_mode<synchronous>, transform_indices = @transform_8, window_bounds = array<i64: 1, 128>}, {transform_indices = @transform_9, window_bounds = array<i64: 8, 128>}]} {
    %c0 = arith.constant 0 : index
    %c0_0 = arith.constant 0 : index
    %0 = vector.load %arg1[%c0, %c0_0] : memref<128x8xbf16, #tpu.memory_space<vmem>>, vector<128x8xbf16>
    %c0_1 = arith.constant 0 : index
    %c0_2 = arith.constant 0 : index
    %1 = vector.load %arg2[%c0_1, %c0_2] : memref<8x64xbf16, #tpu.memory_space<vmem>>, vector<8x64xbf16>
    %cst = arith.constant dense<0.000000e+00> : vector<128x64xf32>
    %2 = tpu.matmul %0, %1, %cst {dimension_numbers = #tpu.dot_dimension_numbers<[1], [0], [0], [1], [0, 0, 1, 1], [], []>} : vector<128x8xbf16>, vector<8x64xbf16>, vector<128x64xf32> -> vector<128x64xf32>
    %c0_3 = arith.constant 0 : index
    %c0_4 = arith.constant 0 : index
    %3 = vector.load %arg3[%c0_3, %c0_4] : memref<1x64xf32, #tpu.memory_space<vmem>>, vector<1x64xf32>
    %4 = vector.broadcast %3 : vector<1x64xf32> to vector<128x64xf32>
    %5 = arith.addf %2, %4 : vector<128x64xf32>
    %cst_5 = arith.constant 0.000000e+00 : f32
    %6 = vector.broadcast %cst_5 : f32 to vector<128x64xf32>
    %7 = arith.maximumf %5, %6 : vector<128x64xf32>
    %8 = arith.truncf %7 : vector<128x64xf32> to vector<128x64xbf16>
    %c0_6 = arith.constant 0 : index
    %c0_7 = arith.constant 0 : index
    %9 = vector.load %arg4[%c0_6, %c0_7] : memref<64x128xbf16, #tpu.memory_space<vmem>>, vector<64x128xbf16>
    %cst_8 = arith.constant dense<0.000000e+00> : vector<128x128xf32>
    %10 = tpu.matmul %8, %9, %cst_8 {dimension_numbers = #tpu.dot_dimension_numbers<[1], [0], [0], [1], [0, 0, 1, 1], [], []>} : vector<128x64xbf16>, vector<64x128xbf16>, vector<128x128xf32> -> vector<128x128xf32>
    %c0_9 = arith.constant 0 : index
    %c0_10 = arith.constant 0 : index
    %11 = vector.load %arg5[%c0_9, %c0_10] : memref<1x128xf32, #tpu.memory_space<vmem>>, vector<1x128xf32>
    %12 = vector.broadcast %11 : vector<1x128xf32> to vector<128x128xf32>
    %13 = arith.addf %10, %12 : vector<128x128xf32>
    %cst_11 = arith.constant 0.000000e+00 : f32
    %14 = vector.broadcast %cst_11 : f32 to vector<128x128xf32>
    %15 = arith.maximumf %13, %14 : vector<128x128xf32>
    %16 = arith.truncf %15 : vector<128x128xf32> to vector<128x128xbf16>
    %c0_12 = arith.constant 0 : index
    %c0_13 = arith.constant 0 : index
    %17 = vector.load %arg6[%c0_12, %c0_13] : memref<128x256xbf16, #tpu.memory_space<vmem>>, vector<128x256xbf16>
    %cst_14 = arith.constant dense<0.000000e+00> : vector<128x256xf32>
    %18 = tpu.matmul %16, %17, %cst_14 {dimension_numbers = #tpu.dot_dimension_numbers<[1], [0], [0], [1], [0, 0, 1, 1], [], []>} : vector<128x128xbf16>, vector<128x256xbf16>, vector<128x256xf32> -> vector<128x256xf32>
    %c0_15 = arith.constant 0 : index
    %c0_16 = arith.constant 0 : index
    %19 = vector.load %arg7[%c0_15, %c0_16] : memref<1x256xf32, #tpu.memory_space<vmem>>, vector<1x256xf32>
    %20 = vector.broadcast %19 : vector<1x256xf32> to vector<128x256xf32>
    %21 = arith.addf %18, %20 : vector<128x256xf32>
    %cst_17 = arith.constant 0.000000e+00 : f32
    %22 = vector.broadcast %cst_17 : f32 to vector<128x256xf32>
    %23 = arith.maximumf %21, %22 : vector<128x256xf32>
    %24 = vector.extract_strided_slice %23 {offsets = [0, 0], sizes = [8, 256], strides = [1, 1]} : vector<128x256xf32> to vector<8x256xf32>
    %25 = vector.extract_strided_slice %23 {offsets = [8, 0], sizes = [8, 256], strides = [1, 1]} : vector<128x256xf32> to vector<8x256xf32>
    %26 = vector.extract_strided_slice %23 {offsets = [16, 0], sizes = [8, 256], strides = [1, 1]} : vector<128x256xf32> to vector<8x256xf32>
    %27 = vector.extract_strided_slice %23 {offsets = [24, 0], sizes = [8, 256], strides = [1, 1]} : vector<128x256xf32> to vector<8x256xf32>
    %28 = vector.extract_strided_slice %23 {offsets = [32, 0], sizes = [8, 256], strides = [1, 1]} : vector<128x256xf32> to vector<8x256xf32>
    %29 = vector.extract_strided_slice %23 {offsets = [40, 0], sizes = [8, 256], strides = [1, 1]} : vector<128x256xf32> to vector<8x256xf32>
    %30 = vector.extract_strided_slice %23 {offsets = [48, 0], sizes = [8, 256], strides = [1, 1]} : vector<128x256xf32> to vector<8x256xf32>
    %31 = vector.extract_strided_slice %23 {offsets = [56, 0], sizes = [8, 256], strides = [1, 1]} : vector<128x256xf32> to vector<8x256xf32>
    %32 = vector.extract_strided_slice %23 {offsets = [64, 0], sizes = [8, 256], strides = [1, 1]} : vector<128x256xf32> to vector<8x256xf32>
    %33 = vector.extract_strided_slice %23 {offsets = [72, 0], sizes = [8, 256], strides = [1, 1]} : vector<128x256xf32> to vector<8x256xf32>
    %34 = vector.extract_strided_slice %23 {offsets = [80, 0], sizes = [8, 256], strides = [1, 1]} : vector<128x256xf32> to vector<8x256xf32>
    %35 = vector.extract_strided_slice %23 {offsets = [88, 0], sizes = [8, 256], strides = [1, 1]} : vector<128x256xf32> to vector<8x256xf32>
    %36 = vector.extract_strided_slice %23 {offsets = [96, 0], sizes = [8, 256], strides = [1, 1]} : vector<128x256xf32> to vector<8x256xf32>
    %37 = vector.extract_strided_slice %23 {offsets = [104, 0], sizes = [8, 256], strides = [1, 1]} : vector<128x256xf32> to vector<8x256xf32>
    %38 = vector.extract_strided_slice %23 {offsets = [112, 0], sizes = [8, 256], strides = [1, 1]} : vector<128x256xf32> to vector<8x256xf32>
    %39 = vector.extract_strided_slice %23 {offsets = [120, 0], sizes = [8, 256], strides = [1, 1]} : vector<128x256xf32> to vector<8x256xf32>
    %40 = arith.maximumf %24, %25 : vector<8x256xf32>
    %41 = arith.maximumf %26, %27 : vector<8x256xf32>
    %42 = arith.maximumf %28, %29 : vector<8x256xf32>
    %43 = arith.maximumf %30, %31 : vector<8x256xf32>
    %44 = arith.maximumf %32, %33 : vector<8x256xf32>
    %45 = arith.maximumf %34, %35 : vector<8x256xf32>
    %46 = arith.maximumf %36, %37 : vector<8x256xf32>
    %47 = arith.maximumf %38, %39 : vector<8x256xf32>
    %48 = arith.maximumf %40, %41 : vector<8x256xf32>
    %49 = arith.maximumf %42, %43 : vector<8x256xf32>
    %50 = arith.maximumf %44, %45 : vector<8x256xf32>
    %51 = arith.maximumf %46, %47 : vector<8x256xf32>
    %52 = arith.maximumf %48, %49 : vector<8x256xf32>
    %53 = arith.maximumf %50, %51 : vector<8x256xf32>
    %54 = arith.maximumf %52, %53 : vector<8x256xf32>
    %55 = arith.truncf %54 : vector<8x256xf32> to vector<8x256xbf16>
    %c0_18 = arith.constant 0 : index
    %c0_19 = arith.constant 0 : index
    %56 = vector.load %arg8[%c0_18, %c0_19] : memref<256x128xbf16, #tpu.memory_space<vmem>>, vector<256x128xbf16>
    %cst_20 = arith.constant dense<0.000000e+00> : vector<8x128xf32>
    %57 = tpu.matmul %55, %56, %cst_20 {dimension_numbers = #tpu.dot_dimension_numbers<[1], [0], [0], [1], [0, 0, 1, 1], [], []>} : vector<8x256xbf16>, vector<256x128xbf16>, vector<8x128xf32> -> vector<8x128xf32>
    %c0_21 = arith.constant 0 : index
    %c0_22 = arith.constant 0 : index
    %58 = vector.load %arg9[%c0_21, %c0_22] : memref<1x128xf32, #tpu.memory_space<vmem>>, vector<1x128xf32>
    %59 = vector.broadcast %58 : vector<1x128xf32> to vector<8x128xf32>
    %60 = arith.addf %57, %59 : vector<8x128xf32>
    %c0_23 = arith.constant 0 : index
    %c0_24 = arith.constant 0 : index
    %61 = vector.load %arg10[%c0_23, %c0_24] : memref<8x128xf32, #tpu.memory_space<vmem>>, vector<8x128xf32>
    tpu.vector_store %arg10[%c0_23, %c0_24], %60 {strides = array<i32>} : memref<8x128xf32, #tpu.memory_space<vmem>>, vector<8x128xf32>,
    return
  }
  func.func @transform_0(%arg0: i32) -> (i32, i32) {
    %c0_i32 = arith.constant 0 : i32
    %c0_i32_0 = arith.constant 0 : i32
    return %arg0, %c0_i32 : i32, i32
  }
  func.func @transform_1(%arg0: i32) -> (i32, i32) {
    %c0_i32 = arith.constant 0 : i32
    %c0_i32_0 = arith.constant 0 : i32
    %c0_i32_1 = arith.constant 0 : i32
    return %c0_i32, %c0_i32_0 : i32, i32
  }
  func.func @transform_2(%arg0: i32) -> (i32, i32) {
    %c0_i32 = arith.constant 0 : i32
    %c0_i32_0 = arith.constant 0 : i32
    %c0_i32_1 = arith.constant 0 : i32
    return %c0_i32, %c0_i32_0 : i32, i32
  }
  func.func @transform_3(%arg0: i32) -> (i32, i32) {
    %c0_i32 = arith.constant 0 : i32
    %c0_i32_0 = arith.constant 0 : i32
    %c0_i32_1 = arith.constant 0 : i32
    return %c0_i32, %c0_i32_0 : i32, i32
  }
  func.func @transform_4(%arg0: i32) -> (i32, i32) {
    %c0_i32 = arith.constant 0 : i32
    %c0_i32_0 = arith.constant 0 : i32
    %c0_i32_1 = arith.constant 0 : i32
    return %c0_i32, %c0_i32_0 : i32, i32
  }
  func.func @transform_5(%arg0: i32) -> (i32, i32) {
    %c0_i32 = arith.constant 0 : i32
    %c0_i32_0 = arith.constant 0 : i32
    %c0_i32_1 = arith.constant 0 : i32
    return %c0_i32, %c0_i32_0 : i32, i32
  }
  func.func @transform_6(%arg0: i32) -> (i32, i32) {
    %c0_i32 = arith.constant 0 : i32
    %c0_i32_0 = arith.constant 0 : i32
    %c0_i32_1 = arith.constant 0 : i32
    return %c0_i32, %c0_i32_0 : i32, i32
  }
  func.func @transform_7(%arg0: i32) -> (i32, i32) {
    %c0_i32 = arith.constant 0 : i32
    %c0_i32_0 = arith.constant 0 : i32
    %c0_i32_1 = arith.constant 0 : i32
    return %c0_i32, %c0_i32_0 : i32, i32
  }
  func.func @transform_8(%arg0: i32) -> (i32, i32) {
    %c0_i32 = arith.constant 0 : i32
    %c0_i32_0 = arith.constant 0 : i32
    %c0_i32_1 = arith.constant 0 : i32
    return %c0_i32, %c0_i32_0 : i32, i32
  }
  func.func @transform_9(%arg0: i32) -> (i32, i32) {
    %c0_i32 = arith.constant 0 : i32
    %c0_i32_0 = arith.constant 0 : i32
    return %arg0, %c0_i32 : i32, i32
  }
}

</mosaic_0001>

<bundles_post_ra>
// kernel: pointnet_forward.1
= control target key start
LH: loop header
LB: loop body
LE: loop exit
PB: predicated region body
PF: predicated region fallthrough
CT: control target
= control target key end

     0   :  { %s1526_s30 = smov 0   ;;  %s1731_s0 = inlined_call_operand.vmem [shape: bf16[256,8], index: 0, kind: input, shape index: {}]   ;;  %s1732_s1 = inlined_call_operand.vmem [shape: bf16[8,64], index: 1, kind: input, shape index: {}]   ;;  %s1733_s2 = inlined_call_operand.vmem [shape: f32[1,64], index: 2, kind: input, shape index: {}]   ;;  %s1734_s3 = inlined_call_operand.vmem [shape: bf16[64,128], index: 3, kind: input, shape index: {}]   ;;  %s1735_s4 = inlined_call_operand.vmem [shape: f32[1,128], index: 4, kind: input, shape index: {}]   ;;  %s1736_s5 = inlined_call_operand.vmem [shape: bf16[128,256], index: 5, kind: input, shape index: {}]   ;;  %s1737_s6 = inlined_call_operand.vmem [shape: f32[1,256], index: 6, kind: input, shape index: {}]   ;;  %s1738_s7 = inlined_call_operand.vmem [shape: bf16[256,128], index: 7, kind: input, shape index: {}]   ;;  %s1739_s8 = inlined_call_operand.vmem [shape: f32[1,128], index: 8, kind: input, shape index: {}]   ;;  %s1740_s9 = inlined_call_operand.vmem [shape: f32[16,128], index: 9, kind: output, shape index: {}]  }
   0x1 LB: > { %s1532_s10 = sadd.s32 4294967295, %s1473_s30   ;;  %p1251_p0 = scmp.ge.s32.totalorder %s1473_s30, 1  ;;  %s1473_s30 = sphi %s1526_s30, %s19_s30  }
   0x2   : > { %p288_p1 = scmp.lt.s32.totalorder %s1473_s30, 3 }
   0x4   : > { %p289_p2 = pnand %p1251_p0, %p288_p1 }
   0x5   : > { %v350_v0 = vld [vmem:[%s1732_s1] sm:$0xf] (!%p289_p2)  ;;  %vm423_vm0 = vcmask (!%p289_p2), 1043456   ;;  %s1252_s13 = sshll.u32 (!%p289_p2), %s1532_s10, 4  ;;  %vm398_vm1 = vcmask (!%p289_p2), 64512   ;;  %v1424_v3 = vld [vmem:[%s1734_s3 + $0x8] sm:$0xff] (!%p289_p2)  }
   0x6   : > { %292 = sbr.rel (%p289_p2) target bundleno = 965 (0x3c5), region = 56  ;;  %v1423_v1 = vld [vmem:[%s1734_s3] sm:$0xff] (!%p289_p2)   ;;  %1405 = vmatprep.subr.msk.bf16.mxu1 (!%p289_p2), %vm423_vm0, %v350_v0  ;;  %v425_v2 = vsel (!%p289_p2), %vm423_vm0, %v350_v0, 0  ;;  %p324_p3 = scmp.lt.s32.totalorder (!%p289_p2), %s1252_s13, 31  ;;  %v1425_v7 = vld [vmem:[%s1734_s3 + $0x10] sm:$0xff] (!%p289_p2)   ;;  %v1426_v13 = vld [vmem:[%s1734_s3 + $0x18] sm:$0xff] (!%p289_p2)  }
   0x7   : > { %1364 = vmatpush3.bf16.msra.mxu1 (!%p289_p2), %v425_v2  ;;  %v1427_v14 = vld [vmem:[%s1736_s5 + $0x4] ss:$8 sps:$4 sm:$0xff] (!%p289_p2)   ;;  %v1429_v15 = vld [vmem:[%s1736_s5] ss:$8 sps:$4 sm:$0xff] (!%p289_p2)   ;;  %v1430_v16 = vld [vmem:[%s1736_s5 + $0x14] ss:$8 sps:$4 sm:$0xff] (!%p289_p2)  }
   0x8   : > { %1381 = vmatprep.subr.bf16.mxu1 (!%p289_p2), %v1423_v1  ;;  %841 = vmatprep.subr.bf16.mxu0 (!%p289_p2), %v1427_v14  ;;  %v1432_v17 = vld [vmem:[%s1736_s5 + $0x10] ss:$8 sps:$4 sm:$0xff] (!%p289_p2)   ;;  %v1433_v18 = vld [vmem:[%s1736_s5 + $0x24] ss:$8 sps:$4 sm:$0xff] (!%p289_p2)   ;;  %v1435_v19 = vld [vmem:[%s1736_s5 + $0x20] ss:$8 sps:$4 sm:$0xff] (!%p289_p2)  }
   0x9   : > { %842 = vmatpush1.bf16.msra.mxu0 (!%p289_p2), %v1429_v15  ;;  %v1436_v20 = vld [vmem:[%s1736_s5 + $0x34] ss:$8 sps:$4 sm:$0xff] (!%p289_p2)   ;;  %v1438_v21 = vld [vmem:[%s1736_s5 + $0x30] ss:$8 sps:$4 sm:$0xff] (!%p289_p2)   ;;  %v1439_v22 = vld [vmem:[%s1736_s5 + $0x44] ss:$8 sps:$4 sm:$0xff] (!%p289_p2)  }
   0xa   : > { %843 = vmatprep.subr.bf16.mxu0 (!%p289_p2), %v1430_v16  ;;  %v1441_v23 = vld [vmem:[%s1736_s5 + $0x40] ss:$8 sps:$4 sm:$0xff] (!%p289_p2)   ;;  %v1442_v24 = vld [vmem:[%s1736_s5 + $0x54] ss:$8 sps:$4 sm:$0xff] (!%p289_p2)   ;;  %v1444_v25 = vld [vmem:[%s1736_s5 + $0x50] ss:$8 sps:$4 sm:$0xff] (!%p289_p2)  }
   0xb   : > { %v1255_v26 = vld [vmem:[%s1733_s2] ss:$0 sm:$0xff] (!%p289_p2)  ;;  %vm587_vm2 = vcmask (!%p289_p2), 523264   ;;  %p329_p4 = scmp.lt.s32.totalorder (!%p289_p2), %s1532_s10, 1 }
   0xd   : > { %s1742_s13 = smov (!%p324_p3, %s1252_s13), 31  ;;  %844 = vmatpush1.bf16.msra.mxu0 %v1432_v17  ;;  %s1744_s10 = smov (!%p329_p4, %s1532_s10), 1 }
   0xe   : > { %s1253_s16 = sshll.u32 %s1742_s13, 2  ;;  %845 = vmatprep.subr.bf16.mxu0 %v1433_v18  ;;  %s1254_s20 = sshll.u32 %s1744_s10, 3 }
   0xf   : > { %s327_s19 = scalar_lea.vmem %s1731_s0, %s1253_s16  ;;  %s332_s25 = scalar_lea.vmem %s1740_s9, %s1254_s20 }
  0x10   : > { %v1415_v4 = vld [vmem:[%s327_s19] sm:$0xff]   ;;  %v1416_v5 = vld [vmem:[%s327_s19 + $0x8] sm:$0xff]   ;;  %v1417_v6 = vld [vmem:[%s327_s19 + $0x10] sm:$0xff]  }
  0x11   : > { %1365 = vmatprep.mubr.msk.bf16.mxu1 %vm398_vm1, %v1415_v4  ;;  %v1418_v8 = vld [vmem:[%s327_s19 + $0x18] sm:$0xff]   ;;  %v1419_v9 = vld [vmem:[%s327_s19 + $0x20] sm:$0xff]   ;;  %v1420_v10 = vld [vmem:[%s327_s19 + $0x28] sm:$0xff]   ;;  %846 = vmatpush1.bf16.msra.mxu0 %v1435_v19 }
  0x12   : > { %1366 = vmatmul.mubr.msk.bf16.vlgmr.msra.gmra.mrb[0].mxu1 %vm398_vm1, %v1416_v5  ;;  %v1421_v11 = vld [vmem:[%s327_s19 + $0x30] sm:$0xff]   ;;  %v1422_v12 = vld [vmem:[%s327_s19 + $0x38] sm:$0xff]   ;;  %847 = vmatprep.subr.bf16.mxu0 %v1436_v20  ;;  %v1445_v19 = vld [vmem:[%s1736_s5 + $0x64] ss:$8 sps:$4 sm:$0xff]  }
  0x13   : > { %1369 = vmatprep.mubr.msk.bf16.mxu1 %vm398_vm1, %v1417_v6  ;;  %1382 = vmatpush3.bf16.msra.mxu1 %v1423_v1  ;;  %v1447_v20 = vld [vmem:[%s1736_s5 + $0x60] ss:$8 sps:$4 sm:$0xff]  }
  0x14   : > { %1383 = vmatprep.subr.bf16.mxu1 %v1424_v3 }
  0x15   : > { %848 = vmatpush1.bf16.msra.mxu0 %v1438_v21  ;;  %v1448_v21 = vld [vmem:[%s1736_s5 + $0x74] ss:$8 sps:$4 sm:$0xff]  }
  0x16   : > { %849 = vmatprep.subr.bf16.mxu0 %v1439_v22  ;;  %v1450_v22 = vld [vmem:[%s1736_s5 + $0x70] ss:$8 sps:$4 sm:$0xff]  }
  0x17   : > { %1384 = vmatpush3.bf16.msra.mxu1 %v1424_v3 }
  0x18   : > { %1385 = vmatprep.subr.bf16.mxu1 %v1425_v7 }
  0x19   : > { %850 = vmatpush1.bf16.msra.mxu0 %v1441_v23  ;;  %v1475_v23 = vmov 0  }
  0x1a   : > { %1370 = vmatmul.mubr.msk.bf16.gmra.mrb[4].mxu1 %vm398_vm1, %v1418_v8  ;;  %851 = vmatprep.subr.bf16.mxu0 %v1442_v24  ;;  %v1272_v24 = vld [vmem:[%s1735_s4] ss:$0 sm:$0xff] }
  0x1b   : > { %1373 = vmatprep.mubr.msk.bf16.mxu1 %vm398_vm1, %v1419_v9  ;;  %1386 = vmatpush3.bf16.msra.mxu1 %v1425_v7 }
  0x1c   : > { %1387 = vmatprep.subr.bf16.mxu1 %v1426_v13  ;;  %873 = vmatprep.mubr.bf16.mxu0 %v1475_v23 }
  0x1d   : > { %852 = vmatpush1.bf16.msra.mxu0 %v1444_v25 }
  0x1e   : > { %853 = vmatprep.subr.bf16.mxu0 %v1445_v19  ;;  %v1453_v19 = vld [vmem:[%s1738_s7 + $0x48] sm:$0xff]  }
  0x1f   : > { %1388 = vmatpush3.bf16.msra.mxu1 %v1426_v13 }
  0x21   : > { %854 = vmatpush1.bf16.msra.mxu0 %v1447_v20  ;;  %v1454_v20 = vld [vmem:[%s1738_s7 + $0x8] sm:$0xff]  }
  0x22   : > { %1374 = vmatmul.mubr.msk.bf16.gmra.mrb[8].mxu1 %vm398_vm1, %v1420_v10  ;;  %855 = vmatprep.subr.bf16.mxu0 %v1448_v21  ;;  %v1455_v21 = vld [vmem:[%s1738_s7 + $0x50] sm:$0xff]  }
  0x23   : > { %1377 = vmatprep.mubr.msk.bf16.mxu1 %vm398_vm1, %v1421_v11 }
  0x25   : > { %856 = vmatpush1.bf16.msra.mxu0 %v1450_v22  ;;  %v1456_v22 = vld [vmem:[%s1738_s7 + $0x10] sm:$0xff]  }
  0x2a   : > { %1378 = vmatmul.mubr.msk.bf16.gmra.mrb[12].mxu1 %vm398_vm1, %v1422_v12 }
  0xe5   : > { %v1367_v27 = vpop.f32.mrb[0].mxu1 }
  0xe6   : > { %v470_v28 = vadd.f32 %v1367_v27, %v1255_v26  ;;  %v461_v29 = vpop.f32.mrb[1].mxu1 }
  0xe7   : > { %v462_v30 = vadd.f32 %v1255_v26, %v461_v29  ;;  %v1368_v31 = vpop.f32.mrb[2].mxu1 }
  0xe8   : > { %v473_v32 = vadd.f32 %v1368_v31, %v1255_v26  ;;  %v464_v33 = vpop.f32.mrb[3].mxu1  ;;  %v526_v35 = vmax.f32 %v470_v28, 0.0 }
  0xe9   : > { %v465_v34 = vadd.f32 %v1255_v26, %v464_v33  ;;  %v524_v37 = vmax.f32 %v462_v30, 0.0 }
  0xea   : > { %v527_v36 = vmax.f32 %v473_v32, 0.0 }
  0xeb   : > { %v525_v38 = vmax.f32 %v465_v34, 0.0 }
  0xec   : > { %v541_v39 = vpack.c.bf16 %v527_v36, %v526_v35 }
  0xed   : > { %v540_v40 = vpack.c.bf16 %v525_v38, %v524_v37  ;;  %v1371_v41 = vpop.f32.mrb[4].mxu1 }
  0xee   : > { %v486_v42 = vadd.f32 %v1371_v41, %v1255_v26  ;;  %v477_v43 = vpop.f32.mrb[5].mxu1 }
  0xef   : > { %v478_v44 = vadd.f32 %v1255_v26, %v477_v43  ;;  %1389 = vmatprep.mubr.msk.bf16.mxu1 %vm587_vm2, %v540_v40  ;;  %v1372_v45 = vpop.f32.mrb[6].mxu1 }
  0xf0   : > { %v530_v46 = vmax.f32 %v486_v42, 0.0  ;;  %v489_v47 = vadd.f32 %v1372_v45, %v1255_v26  ;;  %1390 = vmatmul.mubr.msk.bf16.vlgmr.msra.gmra.mrb[16].mxu1 %vm587_vm2, %v541_v39  ;;  %v480_v48 = vpop.f32.mrb[7].mxu1 }
  0xf1   : > { %v528_v49 = vmax.f32 %v478_v44, 0.0  ;;  %v481_v50 = vadd.f32 %v1255_v26, %v480_v48 }
  0xf2   : > { %v531_v51 = vmax.f32 %v489_v47, 0.0 }
  0xf3   : > { %v529_v52 = vmax.f32 %v481_v50, 0.0 }
  0xf4   : > { %v543_v53 = vpack.c.bf16 %v531_v51, %v530_v46 }
  0xf5   : > { %v542_v54 = vpack.c.bf16 %v529_v52, %v528_v49  ;;  %v1375_v55 = vpop.f32.mrb[8].mxu1 }
  0xf6   : > { %v502_v56 = vadd.f32 %v1375_v55, %v1255_v26  ;;  %v493_v57 = vpop.f32.mrb[9].mxu1 }
  0xf7   : > { %1393 = vmatprep.mubr.msk.bf16.mxu1 %vm587_vm2, %v542_v54  ;;  %v494_v58 = vadd.f32 %v1255_v26, %v493_v57  ;;  %v1376_v59 = vpop.f32.mrb[10].mxu1 }
  0xf8   : > { %1394 = vmatmul.mubr.msk.bf16.gmra.mrb[20].mxu1 %vm587_vm2, %v543_v53  ;;  %v534_v60 = vmax.f32 %v502_v56, 0.0  ;;  %v505_v61 = vadd.f32 %v1376_v59, %v1255_v26  ;;  %v496_v62 = vpop.f32.mrb[11].mxu1 }
  0xf9   : > { %v532_v63 = vmax.f32 %v494_v58, 0.0  ;;  %v497_v0 = vadd.f32 %v1255_v26, %v496_v62 }
  0xfa   : > { %v535_v1 = vmax.f32 %v505_v61, 0.0 }
  0xfb   : > { %v533_v2 = vmax.f32 %v497_v0, 0.0 }
  0xfc   : > { %v545_v3 = vpack.c.bf16 %v535_v1, %v534_v60 }
  0xfd   : > { %v544_v4 = vpack.c.bf16 %v533_v2, %v532_v63  ;;  %v1379_v5 = vpop.f32.mrb[12].mxu1 }
  0xfe   : > { %v518_v6 = vadd.f32 %v1379_v5, %v1255_v26  ;;  %v509_v7 = vpop.f32.mrb[13].mxu1 }
  0xff   : > { %1397 = vmatprep.mubr.msk.bf16.mxu1 %vm587_vm2, %v544_v4  ;;  %v510_v8 = vadd.f32 %v1255_v26, %v509_v7  ;;  %v1380_v9 = vpop.f32.mrb[14].mxu1 }
 0x100   : > { %1398 = vmatmul.mubr.msk.bf16.gmra.mrb[24].mxu1 %vm587_vm2, %v545_v3  ;;  %v538_v10 = vmax.f32 %v518_v6, 0.0  ;;  %v521_v11 = vadd.f32 %v1380_v9, %v1255_v26  ;;  %v512_v12 = vpop.f32.mrb[15].mxu1 }
 0x101   : > { %v536_v13 = vmax.f32 %v510_v8, 0.0  ;;  %v513_v14 = vadd.f32 %v1255_v26, %v512_v12 }
 0x102   : > { %v539_v15 = vmax.f32 %v521_v11, 0.0 }
 0x103   : > { %v537_v16 = vmax.f32 %v513_v14, 0.0 }
 0x104   : > { %v547_v17 = vpack.c.bf16 %v539_v15, %v538_v10 }
 0x105   : > { %v546_v18 = vpack.c.bf16 %v537_v16, %v536_v13 }
 0x107   : > { %1401 = vmatprep.mubr.msk.bf16.mxu1 %vm587_vm2, %v546_v18  ;;  %v1452_v18 = vld [vmem:[%s1738_s7] sm:$0xff]  }
 0x108   : > { %1402 = vmatmul.mubr.msk.bf16.gmra.mrb[28].mxu1 %vm587_vm2, %v547_v17  ;;  %v1451_v17 = vld [vmem:[%s1738_s7 + $0x40] sm:$0xff]  }
 0x109   : > { %1341 = vmatprep.subr.bf16.mxu1 %v1451_v17 }
 0x10a   : > { %1342 = vmatpush3.bf16.msra.mxu1 %v1452_v18 }
 0x10b   : > { %1343 = vmatprep.subr.bf16.mxu1 %v1453_v19 }
 0x10e   : > { %1344 = vmatpush3.bf16.msra.mxu1 %v1454_v20 }
 0x10f   : > { %1345 = vmatprep.subr.bf16.mxu1 %v1455_v21 }
 0x112   : > { %1346 = vmatpush3.bf16.msra.mxu1 %v1456_v22 }
 0x1c3   : > { %v1391_v25 = vpop.f32.mrb[16].mxu1 }
 0x1c4   : > { %v655_v26 = vadd.f32 %v1391_v25, %v1272_v24  ;;  %v646_v27 = vpop.f32.mrb[17].mxu1  ;;  %v1459_v25 = vld [vmem:[%s1738_s7 + $0x60] sm:$0xff]  }
 0x1c5   : > { %v647_v28 = vadd.f32 %v1272_v24, %v646_v27  ;;  %v1392_v29 = vpop.f32.mrb[18].mxu1  ;;  %v1461_v27 = vld [vmem:[%s1738_s7 + $0x68] sm:$0xff]  }
 0x1c6   : > { %v658_v30 = vadd.f32 %v1392_v29, %v1272_v24  ;;  %v649_v31 = vpop.f32.mrb[19].mxu1  ;;  %v711_v33 = vmax.f32 %v655_v26, 0.0  ;;  %v1460_v26 = vld [vmem:[%s1738_s7 + $0x20] sm:$0xff]   ;;  %v1463_v29 = vld [vmem:[%s1738_s7 + $0x70] sm:$0xff]  }
 0x1c7   : > { %v650_v32 = vadd.f32 %v1272_v24, %v649_v31  ;;  %v709_v35 = vmax.f32 %v647_v28, 0.0  ;;  %v1462_v28 = vld [vmem:[%s1738_s7 + $0x28] sm:$0xff]   ;;  %v1465_v31 = vld [vmem:[%s1738_s7 + $0x78] sm:$0xff]  }
 0x1c8   : > { %v712_v34 = vmax.f32 %v658_v30, 0.0  ;;  %v1464_v30 = vld [vmem:[%s1738_s7 + $0x30] sm:$0xff]  }
 0x1c9   : > { %v710_v36 = vmax.f32 %v650_v32, 0.0  ;;  %v1466_v32 = vld [vmem:[%s1738_s7 + $0x38] sm:$0xff]  }
 0x1ca   : > { %v726_v37 = vpack.c.bf16 %v712_v34, %v711_v33  ;;  %v751_v33 = vlaneseq }
 0x1cb   : > { %v725_v38 = vpack.c.bf16 %v710_v36, %v709_v35  ;;  %v1395_v39 = vpop.f32.mrb[20].mxu1  ;;  %v749_v36 = vld [vmem:[%s1737_s6] sm:$0x3] }
 0x1cc   : > { %v671_v40 = vadd.f32 %v1395_v39, %v1272_v24  ;;  %v662_v41 = vpop.f32.mrb[21].mxu1  ;;  %v752_v34 = vshrl.u32 %v751_v33, 7 }
 0x1cd   : > { %v663_v42 = vadd.f32 %v1272_v24, %v662_v41  ;;  %874 = vmatmul.mubr.bf16.vlgmr.msra.gmra.mrb[0].mxu0 %v725_v38  ;;  %v1396_v43 = vpop.f32.mrb[22].mxu1 }
 0x1ce   : > { %v715_v44 = vmax.f32 %v671_v40, 0.0  ;;  %v674_v45 = vadd.f32 %v1396_v43, %v1272_v24  ;;  %v665_v46 = vpop.f32.mrb[23].mxu1  ;;  %883 = vmatprep.mubr.bf16.mxu0 %v1475_v23  ;;  %v753_v35 = vsub.s32 0, %v752_v34 }
 0x1cf   : > { %v713_v47 = vmax.f32 %v663_v42, 0.0  ;;  %v666_v48 = vadd.f32 %v1272_v24, %v665_v46 }
 0x1d0   : > { %v716_v49 = vmax.f32 %v674_v45, 0.0  ;;  %v1684_v38 = vrot.slane %v749_v36, %v753_v35 }
 0x1d1   : > { %v714_v50 = vmax.f32 %v666_v48, 0.0 }
 0x1d2   : > { %v728_v51 = vpack.c.bf16 %v716_v49, %v715_v44 }
 0x1d3   : > { %v727_v52 = vpack.c.bf16 %v714_v50, %v713_v47  ;;  %v1399_v53 = vpop.f32.mrb[24].mxu1 }
 0x1d4   : > { %v687_v54 = vadd.f32 %v1399_v53, %v1272_v24  ;;  %v678_v55 = vpop.f32.mrb[25].mxu1 }
 0x1d5   : > { %884 = vmatmul.mubr.bf16.gmra.mrb[4].mxu0 %v726_v37  ;;  %v679_v56 = vadd.f32 %v1272_v24, %v678_v55  ;;  %v1400_v57 = vpop.f32.mrb[26].mxu1  ;;  %v757_v37 = vsub.s32 1, %v752_v34 }
 0x1d6   : > { %v719_v58 = vmax.f32 %v687_v54, 0.0  ;;  %893 = vmatprep.mubr.bf16.mxu0 %v1475_v23  ;;  %v690_v59 = vadd.f32 %v1400_v57, %v1272_v24  ;;  %v681_v60 = vpop.f32.mrb[27].mxu1 }
 0x1d7   : > { %v717_v61 = vmax.f32 %v679_v56, 0.0  ;;  %v682_v62 = vadd.f32 %v1272_v24, %v681_v60  ;;  %v1686_v39 = vrot.slane %v749_v36, %v757_v37 }
 0x1d8   : > { %v720_v63 = vmax.f32 %v690_v59, 0.0 }
 0x1d9   : > { %v718_v0 = vmax.f32 %v682_v62, 0.0 }
 0x1da   : > { %v730_v1 = vpack.c.bf16 %v720_v63, %v719_v58 }
 0x1db   : > { %v729_v2 = vpack.c.bf16 %v718_v0, %v717_v61  ;;  %v1403_v3 = vpop.f32.mrb[28].mxu1 }
 0x1dc   : > { %v703_v4 = vadd.f32 %v1403_v3, %v1272_v24  ;;  %v694_v5 = vpop.f32.mrb[29].mxu1 }
 0x1dd   : > { %894 = vmatmul.mubr.bf16.gmra.mrb[8].mxu0 %v727_v52  ;;  %v695_v6 = vadd.f32 %v1272_v24, %v694_v5  ;;  %v1404_v7 = vpop.f32.mrb[30].mxu1 }
 0x1de   : > { %903 = vmatprep.mubr.bf16.mxu0 %v1475_v23  ;;  %v723_v8 = vmax.f32 %v703_v4, 0.0  ;;  %v706_v9 = vadd.f32 %v1404_v7, %v1272_v24  ;;  %v697_v10 = vpop.f32.mrb[31].mxu1 }
 0x1df   : > { %v721_v11 = vmax.f32 %v695_v6, 0.0  ;;  %v698_v12 = vadd.f32 %v1272_v24, %v697_v10  ;;  %v1458_v24 = vld [vmem:[%s1738_s7 + $0x18] sm:$0xff]  }
 0x1e0   : > { %v724_v13 = vmax.f32 %v706_v9, 0.0 }
 0x1e1   : > { %v722_v14 = vmax.f32 %v698_v12, 0.0 }
 0x1e2   : > { %v732_v15 = vpack.c.bf16 %v724_v13, %v723_v8 }
 0x1e3   : > { %v731_v16 = vpack.c.bf16 %v722_v14, %v721_v11 }
 0x1e5   : > { %904 = vmatmul.mubr.bf16.gmra.mrb[12].mxu0 %v728_v51 }
 0x1e6   : > { %913 = vmatprep.mubr.bf16.mxu0 %v1475_v23 }
 0x1ed   : > { %914 = vmatmul.mubr.bf16.gmra.mrb[16].mxu0 %v729_v2 }
 0x1ee   : > { %923 = vmatprep.mubr.bf16.mxu0 %v1475_v23 }
 0x1f5   : > { %924 = vmatmul.mubr.bf16.gmra.mrb[20].mxu0 %v730_v1 }
 0x1f6   : > { %933 = vmatprep.mubr.bf16.mxu0 %v1475_v23 }
 0x1fd   : > { %934 = vmatmul.mubr.bf16.gmra.mrb[24].mxu0 %v731_v16 }
 0x1fe   : > { %943 = vmatprep.mubr.bf16.mxu0 %v1475_v23  ;;  %v1457_v23 = vld [vmem:[%s1738_s7 + $0x58] sm:$0xff]  }
 0x1ff   : > { %1347 = vmatprep.subr.bf16.mxu1 %v1457_v23 }
 0x200   : > { %1348 = vmatpush3.bf16.msra.mxu1 %v1458_v24 }
 0x201   : > { %1349 = vmatprep.subr.bf16.mxu1 %v1459_v25 }
 0x204   : > { %1350 = vmatpush3.bf16.msra.mxu1 %v1460_v26 }
 0x205   : > { %944 = vmatmul.mubr.bf16.gmra.mrb[28].mxu0 %v732_v15  ;;  %1351 = vmatprep.subr.bf16.mxu1 %v1461_v27 }
 0x208   : > { %1352 = vmatpush3.bf16.msra.mxu1 %v1462_v28 }
 0x209   : > { %1353 = vmatprep.subr.bf16.mxu1 %v1463_v29 }
 0x20c   : > { %1354 = vmatpush3.bf16.msra.mxu1 %v1464_v30 }
 0x20d   : > { %1355 = vmatprep.subr.bf16.mxu1 %v1465_v31 }
 0x210   : > { %1356 = vmatpush3.bf16.msra.mxu1 %v1466_v32 }
 0x2a0   : > { %v875_v40 = vpop.f32.mrb[0].mxu0 }
 0x2a1   : > { %v876_v41 = vadd.f32 %v875_v40, %v1684_v38  ;;  %v877_v42 = vpop.f32.mrb[1].mxu0 }
 0x2a2   : > { %v878_v43 = vadd.f32 %v877_v42, %v1686_v39  ;;  %v879_v44 = vpop.f32.mrb[2].mxu0 }
 0x2a3   : > { %v880_v45 = vadd.f32 %v879_v44, %v1684_v38  ;;  %v881_v46 = vpop.f32.mrb[3].mxu0  ;;  %v954_v48 = vmax.f32 %v876_v41, 0.0 }
 0x2a4   : > { %v882_v47 = vadd.f32 %v881_v46, %v1686_v39  ;;  %v955_v50 = vmax.f32 %v878_v43, 0.0 }
 0x2a5   : > { %v956_v49 = vmax.f32 %v880_v45, 0.0 }
 0x2a6   : > { %v957_v51 = vmax.f32 %v882_v47, 0.0 }
 0x2a7   : > { %v986_v52 = vmax.f32 %v954_v48, %v956_v49 }
 0x2a8   : > { %v987_v53 = vmax.f32 %v955_v50, %v957_v51  ;;  %v885_v54 = vpop.f32.mrb[4].mxu0 }
 0x2a9   : > { %v886_v55 = vadd.f32 %v885_v54, %v1684_v38  ;;  %v887_v56 = vpop.f32.mrb[5].mxu0 }
 0x2aa   : > { %v888_v57 = vadd.f32 %v887_v56, %v1686_v39  ;;  %v889_v58 = vpop.f32.mrb[6].mxu0 }
 0x2ab   : > { %v890_v59 = vadd.f32 %v889_v58, %v1684_v38  ;;  %v891_v60 = vpop.f32.mrb[7].mxu0  ;;  %v958_v62 = vmax.f32 %v886_v55, 0.0 }
 0x2ac   : > { %v892_v61 = vadd.f32 %v891_v60, %v1686_v39  ;;  %v959_v0 = vmax.f32 %v888_v57, 0.0 }
 0x2ad   : > { %v960_v63 = vmax.f32 %v890_v59, 0.0 }
 0x2ae   : > { %v961_v1 = vmax.f32 %v892_v61, 0.0 }
 0x2af   : > { %v988_v2 = vmax.f32 %v958_v62, %v960_v63 }
 0x2b0   : > { %v989_v3 = vmax.f32 %v959_v0, %v961_v1  ;;  %v895_v4 = vpop.f32.mrb[8].mxu0 }
 0x2b1   : > { %v1002_v5 = vmax.f32 %v986_v52, %v988_v2  ;;  %v896_v6 = vadd.f32 %v895_v4, %v1684_v38  ;;  %v897_v7 = vpop.f32.mrb[9].mxu0 }
 0x2b2   : > { %v1003_v8 = vmax.f32 %v987_v53, %v989_v3  ;;  %v898_v9 = vadd.f32 %v897_v7, %v1686_v39  ;;  %v899_v10 = vpop.f32.mrb[10].mxu0 }
 0x2b3   : > { %v900_v11 = vadd.f32 %v899_v10, %v1684_v38  ;;  %v901_v12 = vpop.f32.mrb[11].mxu0  ;;  %v962_v14 = vmax.f32 %v896_v6, 0.0 }
 0x2b4   : > { %v902_v13 = vadd.f32 %v901_v12, %v1686_v39  ;;  %v963_v16 = vmax.f32 %v898_v9, 0.0 }
 0x2b5   : > { %v964_v15 = vmax.f32 %v900_v11, 0.0 }
 0x2b6   : > { %v965_v17 = vmax.f32 %v902_v13, 0.0 }
 0x2b7   : > { %v990_v18 = vmax.f32 %v962_v14, %v964_v15 }
 0x2b8   : > { %v991_v19 = vmax.f32 %v963_v16, %v965_v17  ;;  %v905_v20 = vpop.f32.mrb[12].mxu0 }
 0x2b9   : > { %v906_v21 = vadd.f32 %v905_v20, %v1684_v38  ;;  %v907_v22 = vpop.f32.mrb[13].mxu0 }
 0x2ba   : > { %v908_v23 = vadd.f32 %v907_v22, %v1686_v39  ;;  %v909_v24 = vpop.f32.mrb[14].mxu0 }
 0x2bb   : > { %v910_v25 = vadd.f32 %v909_v24, %v1684_v38  ;;  %v911_v26 = vpop.f32.mrb[15].mxu0  ;;  %v966_v28 = vmax.f32 %v906_v21, 0.0 }
 0x2bc   : > { %v912_v27 = vadd.f32 %v911_v26, %v1686_v39  ;;  %v967_v30 = vmax.f32 %v908_v23, 0.0 }
 0x2bd   : > { %v968_v29 = vmax.f32 %v910_v25, 0.0 }
 0x2be   : > { %v969_v31 = vmax.f32 %v912_v27, 0.0 }
 0x2bf   : > { %v992_v32 = vmax.f32 %v966_v28, %v968_v29 }
 0x2c0   : > { %v993_v33 = vmax.f32 %v967_v30, %v969_v31  ;;  %v915_v34 = vpop.f32.mrb[16].mxu0 }
 0x2c1   : > { %v1004_v35 = vmax.f32 %v990_v18, %v992_v32  ;;  %v916_v36 = vadd.f32 %v915_v34, %v1684_v38  ;;  %v917_v37 = vpop.f32.mrb[17].mxu0 }
 0x2c2   : > { %v1005_v40 = vmax.f32 %v991_v19, %v993_v33  ;;  %v918_v41 = vadd.f32 %v917_v37, %v1686_v39  ;;  %v919_v42 = vpop.f32.mrb[18].mxu0 }
 0x2c3   : > { %v1010_v43 = vmax.f32 %v1002_v5, %v1004_v35  ;;  %v920_v44 = vadd.f32 %v919_v42, %v1684_v38  ;;  %v921_v45 = vpop.f32.mrb[19].mxu0  ;;  %v970_v48 = vmax.f32 %v916_v36, 0.0 }
 0x2c4   : > { %v922_v46 = vadd.f32 %v921_v45, %v1686_v39  ;;  %v1011_v47 = vmax.f32 %v1003_v8, %v1005_v40  ;;  %v971_v50 = vmax.f32 %v918_v41, 0.0 }
 0x2c5   : > { %v972_v49 = vmax.f32 %v920_v44, 0.0 }
 0x2c6   : > { %v973_v51 = vmax.f32 %v922_v46, 0.0 }
 0x2c7   : > { %v994_v52 = vmax.f32 %v970_v48, %v972_v49 }
 0x2c8   : > { %v995_v53 = vmax.f32 %v971_v50, %v973_v51  ;;  %v925_v54 = vpop.f32.mrb[20].mxu0 }
 0x2c9   : > { %v926_v55 = vadd.f32 %v925_v54, %v1684_v38  ;;  %v927_v56 = vpop.f32.mrb[21].mxu0 }
 0x2ca   : > { %v928_v57 = vadd.f32 %v927_v56, %v1686_v39  ;;  %v929_v58 = vpop.f32.mrb[22].mxu0 }
 0x2cb   : > { %v930_v59 = vadd.f32 %v929_v58, %v1684_v38  ;;  %v931_v60 = vpop.f32.mrb[23].mxu0  ;;  %v974_v62 = vmax.f32 %v926_v55, 0.0 }
 0x2cc   : > { %v932_v61 = vadd.f32 %v931_v60, %v1686_v39  ;;  %v975_v0 = vmax.f32 %v928_v57, 0.0 }
 0x2cd   : > { %v976_v63 = vmax.f32 %v930_v59, 0.0 }
 0x2ce   : > { %v977_v1 = vmax.f32 %v932_v61, 0.0 }
 0x2cf   : > { %v996_v2 = vmax.f32 %v974_v62, %v976_v63 }
 0x2d0   : > { %v997_v3 = vmax.f32 %v975_v0, %v977_v1  ;;  %v935_v4 = vpop.f32.mrb[24].mxu0 }
 0x2d1   : > { %v1006_v5 = vmax.f32 %v994_v52, %v996_v2  ;;  %v936_v6 = vadd.f32 %v935_v4, %v1684_v38  ;;  %v937_v7 = vpop.f32.mrb[25].mxu0 }
 0x2d2   : > { %v1007_v8 = vmax.f32 %v995_v53, %v997_v3  ;;  %v938_v9 = vadd.f32 %v937_v7, %v1686_v39  ;;  %v939_v10 = vpop.f32.mrb[26].mxu0 }
 0x2d3   : > { %v940_v11 = vadd.f32 %v939_v10, %v1684_v38  ;;  %v941_v12 = vpop.f32.mrb[27].mxu0  ;;  %v978_v14 = vmax.f32 %v936_v6, 0.0 }
 0x2d4   : > { %v942_v13 = vadd.f32 %v941_v12, %v1686_v39  ;;  %v979_v16 = vmax.f32 %v938_v9, 0.0 }
 0x2d5   : > { %v980_v15 = vmax.f32 %v940_v11, 0.0 }
 0x2d6   : > { %v981_v17 = vmax.f32 %v942_v13, 0.0 }
 0x2d7   : > { %v998_v18 = vmax.f32 %v978_v14, %v980_v15 }
 0x2d8   : > { %v999_v19 = vmax.f32 %v979_v16, %v981_v17  ;;  %v945_v20 = vpop.f32.mrb[28].mxu0 }
 0x2d9   : > { %v946_v21 = vadd.f32 %v945_v20, %v1684_v38  ;;  %v947_v22 = vpop.f32.mrb[29].mxu0 }
 0x2da   : > { %v948_v23 = vadd.f32 %v947_v22, %v1686_v39  ;;  %v949_v24 = vpop.f32.mrb[30].mxu0 }
 0x2db   : > { %v950_v25 = vadd.f32 %v949_v24, %v1684_v38  ;;  %v951_v26 = vpop.f32.mrb[31].mxu0  ;;  %v982_v28 = vmax.f32 %v946_v21, 0.0 }
 0x2dc   : > { %v952_v27 = vadd.f32 %v951_v26, %v1686_v39  ;;  %v983_v30 = vmax.f32 %v948_v23, 0.0  ;;  %v1301_v39 = vld [vmem:[%s1739_s8] ss:$0 sm:$0xff] }
 0x2dd   : > { %v984_v29 = vmax.f32 %v950_v25, 0.0 }
 0x2de   : > { %v985_v31 = vmax.f32 %v952_v27, 0.0 }
 0x2df   : > { %v1000_v32 = vmax.f32 %v982_v28, %v984_v29 }
 0x2e0   : > { %v1001_v33 = vmax.f32 %v983_v30, %v985_v31 }
 0x2e1   : > { %v1008_v34 = vmax.f32 %v998_v18, %v1000_v32 }
 0x2e2   : > { %v1009_v35 = vmax.f32 %v999_v19, %v1001_v33 }
 0x2e3   : > { %v1012_v36 = vmax.f32 %v1006_v5, %v1008_v34 }
 0x2e4   : > { %v1013_v37 = vmax.f32 %v1007_v8, %v1009_v35 }
 0x2e5   : > { %v1014_v40 = vmax.f32 %v1010_v43, %v1012_v36 }
 0x2e6   : > { %v1015_v41 = vmax.f32 %v1011_v47, %v1013_v37 }
 0x2e7   : > { %v1016_v44 = vpack.c.bf16 %v1014_v40, %v1014_v40 }
 0x2e8   : > { %v1017_v42 = vpack.c.bf16 %v1015_v41, %v1015_v41 }
 0x2ea   : > { %1185 = vmatprep.mubr.bf16.mxu1 %v1017_v42 }
 0x2eb   : > { %1186 = vmatmul.mubr.bf16.vlgmr.msra.gmra.mrb[32].mxu1 %v1016_v44 }
 0x3be   : > { %v1357_v38 = vpop.f32.mrb[32].mxu1 }
 0x3bf   : > { %v1358_v45 = vpop.f32.mrb[33].mxu1 }
 0x3c0   : > { %v1359_v46 = vadd.f32 %v1358_v45, %v1357_v38  ;;  %v1360_v48 = vpop.f32.mrb[34].mxu1 }
 0x3c1   : > { %v1361_v43 = vpop.f32.mrb[35].mxu1 }
 0x3c2   : > { %v1188_v47 = vadd.f32 %v1359_v46, %v1301_v39 }
 0x3c4   : > { %1193 = vst [vmem:[%s332_s25] sm:$0xff] %v1188_v47 }
 0x3c5 PF: > { %s19_s30 = sadd.s32 1, %s1473_s30  }
 0x3c6   : > { %p16_p5 = scmp.ge.s32.totalorder %s19_s30, 4  }
 0x3c8   :  { %18 = sbr.rel (!%p16_p5) target bundleno = 1 (0x1), region = 86 }

</bundles_post_ra>
